<compile_context>
chip_gen: v6e
topology: v6e:2x2x1
jax: 0.10.0
libtpu: 0.0.40
codegen_flags: <defaults>
</compile_context>

<pallas_src>
import functools
import math

import jax
import jax.numpy as jnp
from jax import lax
from jax.experimental import pallas as pl
from jax.experimental.pallas import tpu as pltpu


# --------------------------------------------------------------------------
# Row-tiled linear:  out = (relu?)(x @ W + b)
# --------------------------------------------------------------------------
def _linear_kernel(x_ref, w_ref, b_ref, o_ref, *, apply_relu):
    acc = jnp.dot(x_ref[...], w_ref[...], preferred_element_type=jnp.float32)
    acc = acc + b_ref[...].astype(jnp.float32)
    if apply_relu:
        acc = jnp.maximum(acc, 0.0)
    o_ref[...] = acc.astype(o_ref.dtype)


def linear(x, w, b, *, relu=False, tm_max=512):
    """x: (M, K), w: (K, N), b: (N,) -> (M, N)."""
    m, k = x.shape
    k2, n = w.shape
    assert k == k2
    # Full-dim row block when small (always legal), otherwise a multiple-of-8 tile.
    tm = m if m <= tm_max else tm_max
    grid = (pl.cdiv(m, tm),)
    return pl.pallas_call(
        functools.partial(_linear_kernel, apply_relu=relu),
        out_shape=jax.ShapeDtypeStruct((m, n), x.dtype),
        grid_spec=pltpu.PrefetchScalarGridSpec(
            num_scalar_prefetch=0,
            grid=grid,
            in_specs=[
                pl.BlockSpec((tm, k), lambda i: (i, 0)),
                pl.BlockSpec((k, n), lambda i: (0, 0)),   # weights resident across steps
                pl.BlockSpec((1, n), lambda i: (0, 0)),
            ],
            out_specs=pl.BlockSpec((tm, n), lambda i: (i, 0)),
        ),
        compiler_params=pltpu.CompilerParams(
            dimension_semantics=("parallel",),
            vmem_limit_bytes=64 * 1024 * 1024,
        ),
    )(x, w, b.reshape(1, n))


# --------------------------------------------------------------------------
# Multi-head attention core: one (batch, head) tile per grid step.
# --------------------------------------------------------------------------
def _mha_kernel(q_ref, k_ref, v_ref, o_ref, *, scale):
    q = q_ref[...].astype(jnp.float32) * scale
    k = k_ref[...].astype(jnp.float32)
    s = jnp.einsum("qd,kd->qk", q, k, preferred_element_type=jnp.float32)
    s = s - jnp.max(s, axis=-1, keepdims=True)
    p = jnp.exp(s)
    p = p / jnp.sum(p, axis=-1, keepdims=True)
    o = jnp.dot(p.astype(v_ref.dtype), v_ref[...],
                preferred_element_type=jnp.float32)
    o_ref[...] = o.astype(o_ref.dtype)


def mha_attention(q, k, v):
    """q, k, v: (B, H, S, Dh) -> (B, H, S, Dh) softmax(q k^T / sqrt(Dh)) v."""
    b, h, s, dh = q.shape
    scale = 1.0 / math.sqrt(dh)
    spec = pl.BlockSpec((pl.Squeezed(), pl.Squeezed(), s, dh),
                        lambda i, j: (i, j, 0, 0))
    return pl.pallas_call(
        functools.partial(_mha_kernel, scale=scale),
        out_shape=jax.ShapeDtypeStruct((b, h, s, dh), q.dtype),
        grid_spec=pltpu.PrefetchScalarGridSpec(
            num_scalar_prefetch=0,
            grid=(b, h),
            in_specs=[spec, spec, spec],
            out_specs=spec,
        ),
        compiler_params=pltpu.CompilerParams(
            dimension_semantics=("parallel", "parallel"),
        ),
    )(q, k, v)


# --------------------------------------------------------------------------
# Fused residual add + LayerNorm (PyTorch post-norm, eps=1e-5).
# --------------------------------------------------------------------------
def _add_ln_kernel(x_ref, r_ref, g_ref, b_ref, o_ref, *, eps):
    y = x_ref[...].astype(jnp.float32) + r_ref[...].astype(jnp.float32)
    mu = jnp.mean(y, axis=-1, keepdims=True)
    c = y - mu
    var = jnp.mean(c * c, axis=-1, keepdims=True)
    yn = c * lax.rsqrt(var + eps)
    o_ref[...] = (yn * g_ref[...] + b_ref[...]).astype(o_ref.dtype)


def add_layernorm(x, res, gamma, beta, *, eps=1e-5, tm_max=512):
    m, e = x.shape
    tm = m if m <= tm_max else tm_max
    return pl.pallas_call(
        functools.partial(_add_ln_kernel, eps=eps),
        out_shape=jax.ShapeDtypeStruct((m, e), x.dtype),
        grid_spec=pltpu.PrefetchScalarGridSpec(
            num_scalar_prefetch=0,
            grid=(pl.cdiv(m, tm),),
            in_specs=[
                pl.BlockSpec((tm, e), lambda i: (i, 0)),
                pl.BlockSpec((tm, e), lambda i: (i, 0)),
                pl.BlockSpec((1, e), lambda i: (0, 0)),
                pl.BlockSpec((1, e), lambda i: (0, 0)),
            ],
            out_specs=pl.BlockSpec((tm, e), lambda i: (i, 0)),
        ),
        compiler_params=pltpu.CompilerParams(dimension_semantics=("parallel",)),
    )(x, res, gamma.reshape(1, e), beta.reshape(1, e))


# --------------------------------------------------------------------------
# Positional-encoding add: emb (N, S, E) + pos (S, E) broadcast over batch.
# --------------------------------------------------------------------------
def _add_pos_kernel(e_ref, p_ref, o_ref):
    o_ref[...] = e_ref[...] + p_ref[...]


def add_positional(emb, pos):
    n, s, e = emb.shape
    return pl.pallas_call(
        _add_pos_kernel,
        out_shape=jax.ShapeDtypeStruct((n, s, e), emb.dtype),
        grid_spec=pltpu.PrefetchScalarGridSpec(
            num_scalar_prefetch=0,
            grid=(n,),
            in_specs=[
                pl.BlockSpec((pl.Squeezed(), s, e), lambda i: (i, 0, 0)),
                pl.BlockSpec((s, e), lambda i: (0, 0)),
            ],
            out_specs=pl.BlockSpec((pl.Squeezed(), s, e), lambda i: (i, 0, 0)),
        ),
        compiler_params=pltpu.CompilerParams(dimension_semantics=("parallel",)),
    )(emb, pos)


# --------------------------------------------------------------------------
# Full PatchTransformerEncoder forward.
# --------------------------------------------------------------------------
def patch_transformer_encoder_forward(x, params, *, patch_size, num_heads):
    n, c, h, w = x.shape
    p = patch_size
    hp, wp = h // p, w // p
    s = hp * wp
    e = params["conv_w"].shape[0]
    dh = e // num_heads

    # --- patch embedding: stride-P Conv2d == per-patch linear ------------
    # (N, C, H, W) -> (N*S, C*P*P) with (c, dh, dw) ordering matching the
    # flattened Conv2d weight (E, C, P, P).
    xp = x.reshape(n, c, hp, p, wp, p)
    xp = xp.transpose(0, 2, 4, 1, 3, 5).reshape(n * s, c * p * p)
    wc = params["conv_w"].reshape(e, c * p * p).T                 # (CPP, E)
    emb = linear(xp, wc, params["conv_b"]).reshape(n, s, e)       # (N, S, E)

    # --- positional encodings --------------------------------------------
    pos = params["pos"][:, :s].T                                  # (S, E)
    y2d = add_positional(emb, pos).reshape(n * s, e)

    # --- transformer encoder layers (post-norm, relu, dropout=identity) --
    for lp in params["layers"]:
        qkv = linear(y2d, lp["w_qkv"], lp["b_qkv"])               # (N*S, 3E)
        qkv = qkv.reshape(n, s, 3, num_heads, dh)
        q = qkv[:, :, 0].transpose(0, 2, 1, 3)                    # (N, H, S, Dh)
        k = qkv[:, :, 1].transpose(0, 2, 1, 3)
        v = qkv[:, :, 2].transpose(0, 2, 1, 3)

        attn = mha_attention(q, k, v)                             # (N, H, S, Dh)
        attn = attn.transpose(0, 2, 1, 3).reshape(n * s, e)
        attn = linear(attn, lp["w_o"], lp["b_o"])                 # out-proj
        y2d = add_layernorm(attn, y2d, lp["ln1_g"], lp["ln1_b"])  # LN1(x + attn)

        ff = linear(y2d, lp["w_1"], lp["b_1"], relu=True)
        ff = linear(ff, lp["w_2"], lp["b_2"])
        y2d = add_layernorm(ff, y2d, lp["ln2_g"], lp["ln2_b"])    # LN2(x + ff)

    # PyTorch returns seq-first: (S, N, E)
    return y2d.reshape(n, s, e).transpose(1, 0, 2)


# --------------------------------------------------------------------------
# Pure-JAX reference (mirrors PyTorch eval-mode semantics).
# --------------------------------------------------------------------------
def reference_forward(x, params, *, patch_size, num_heads):
    hi = lax.Precision.HIGHEST
    n, c, h, w = x.shape
    p = patch_size
    hp, wp = h // p, w // p
    s = hp * wp
    e = params["conv_w"].shape[0]
    dh = e // num_heads

    xp = x.reshape(n, c, hp, p, wp, p).transpose(0, 2, 4, 1, 3, 5)
    xp = xp.reshape(n, s, c * p * p)
    wc = params["conv_w"].reshape(e, c * p * p)
    y = jnp.einsum("nsk,ek->nse", xp, wc, precision=hi) + params["conv_b"]
    y = y + params["pos"][:, :s].T[None]

    def layer_norm(z, g, b, eps=1e-5):
        mu = jnp.mean(z, axis=-1, keepdims=True)
        var = jnp.mean((z - mu) ** 2, axis=-1, keepdims=True)
        return (z - mu) / jnp.sqrt(var + eps) * g + b

    for lp in params["layers"]:
        qkv = jnp.einsum("nse,ef->nsf", y, lp["w_qkv"], precision=hi) + lp["b_qkv"]
        qkv = qkv.reshape(n, s, 3, num_heads, dh)
        q = qkv[:, :, 0].transpose(0, 2, 1, 3)
        k = qkv[:, :, 1].transpose(0, 2, 1, 3)
        v = qkv[:, :, 2].transpose(0, 2, 1, 3)
        sc = jnp.einsum("nhqd,nhkd->nhqk", q, k, precision=hi) / math.sqrt(dh)
        pr = jax.nn.softmax(sc, axis=-1)
        at = jnp.einsum("nhqk,nhkd->nhqd", pr, v, precision=hi)
        at = at.transpose(0, 2, 1, 3).reshape(n, s, e)
        at = jnp.einsum("nse,ef->nsf", at, lp["w_o"], precision=hi) + lp["b_o"]
        y = layer_norm(y + at, lp["ln1_g"], lp["ln1_b"])
        ff = jax.nn.relu(jnp.einsum("nse,ef->nsf", y, lp["w_1"], precision=hi) + lp["b_1"])
        ff = jnp.einsum("nsf,fe->nse", ff, lp["w_2"], precision=hi) + lp["b_2"]
        y = layer_norm(y + ff, lp["ln2_g"], lp["ln2_b"])

    return y.transpose(1, 0, 2)


# --------------------------------------------------------------------------
# Deterministic parameter init.
# --------------------------------------------------------------------------
def init_params(key, *, in_channels, embedding_dim, patch_size, num_heads,
                dim_feedforward, num_layers):
    del num_heads
    e = embedding_dim
    keys = jax.random.split(key, 3 + num_layers)
    params = {
        "conv_w": 0.05 * jax.random.normal(
            keys[0], (e, in_channels, patch_size, patch_size), jnp.float32),
        "conv_b": 0.05 * jax.random.normal(keys[1], (e,), jnp.float32),
        "pos": jax.random.uniform(keys[2], (e, 500), jnp.float32),
        "layers": [],
    }
    for i in range(num_layers):
        lk = jax.random.split(keys[3 + i], 12)
        params["layers"].append({
            "w_qkv": 0.05 * jax.random.normal(lk[0], (e, 3 * e), jnp.float32),
            "b_qkv": 0.05 * jax.random.normal(lk[1], (3 * e,), jnp.float32),
            "w_o": 0.05 * jax.random.normal(lk[2], (e, e), jnp.float32),
            "b_o": 0.05 * jax.random.normal(lk[3], (e,), jnp.float32),
            "ln1_g": 1.0 + 0.1 * jax.random.normal(lk[4], (e,), jnp.float32),
            "ln1_b": 0.1 * jax.random.normal(lk[5], (e,), jnp.float32),
            "w_1": 0.05 * jax.random.normal(lk[6], (e, dim_feedforward), jnp.float32),
            "b_1": 0.05 * jax.random.normal(lk[7], (dim_feedforward,), jnp.float32),
            "w_2": 0.05 * jax.random.normal(lk[8], (dim_feedforward, e), jnp.float32),
            "b_2": 0.05 * jax.random.normal(lk[9], (e,), jnp.float32),
            "ln2_g": 1.0 + 0.1 * jax.random.normal(lk[10], (e,), jnp.float32),
            "ln2_b": 0.1 * jax.random.normal(lk[11], (e,), jnp.float32),
        })
    return params


if __name__ == "__main__":
    key = jax.random.PRNGKey(0)
    kp, kx = jax.random.split(key)

    # Small shapes consistent with the module defaults:
    #   in_channels=3, embedding_dim=128, patch_size=16, num_heads=4,
    #   dim_feedforward=1024, num_layers=4; 64x64 image -> S=16 patches.
    n, c, h, w = 2, 3, 64, 64
    embedding_dim, patch_size, num_heads = 128, 16, 4
    dim_feedforward, num_layers = 1024, 4

    params = init_params(kp, in_channels=c, embedding_dim=embedding_dim,
                         patch_size=patch_size, num_heads=num_heads,
                         dim_feedforward=dim_feedforward, num_layers=num_layers)
    x = jax.random.normal(kx, (n, c, h, w), jnp.float32)

    out = patch_transformer_encoder_forward(
        x, params, patch_size=patch_size, num_heads=num_heads)
    out = jax.block_until_ready(out)

    ref = reference_forward(x, params, patch_size=patch_size, num_heads=num_heads)
    seq = (h // patch_size) * (w // patch_size)
    assert out.shape == (seq, n, embedding_dim), out.shape
    assert jnp.allclose(out, ref, atol=3e-2, rtol=3e-2), float(
        jnp.max(jnp.abs(out - ref)))

    print("KERNEL_OK")
</pallas_src>

<mosaic_0001>
module attributes {stable_mosaic.version = 11 : i64} {
  func.func @_linear_kernel(%arg0: i32, %arg1: memref<32x768xf32, #tpu.memory_space<vmem>>, %arg2: memref<768x128xf32, #tpu.memory_space<vmem>>, %arg3: memref<1x128xf32, #tpu.memory_space<vmem>>, %arg4: memref<32x128xf32, #tpu.memory_space<vmem>>) attributes {dimension_semantics = [#tpu.dimension_semantics<parallel>], iteration_bounds = array<i64: 1>, scalar_prefetch = 0 : i64, scratch_operands = 0 : i64, tpu.core_type = #tpu.core_type<tc>, window_params = [{transform_indices = @transform_0, window_bounds = array<i64: 32, 768>}, {pipeline_mode = #tpu.pipeline_mode<synchronous>, transform_indices = @transform_1, window_bounds = array<i64: 768, 128>}, {pipeline_mode = #tpu.pipeline_mode<synchronous>, transform_indices = @transform_2, window_bounds = array<i64: 1, 128>}, {transform_indices = @transform_3, window_bounds = array<i64: 32, 128>}]} {
    %c0 = arith.constant 0 : index
    %c0_0 = arith.constant 0 : index
    %0 = vector.load %arg1[%c0, %c0_0] : memref<32x768xf32, #tpu.memory_space<vmem>>, vector<32x768xf32>
    %c0_1 = arith.constant 0 : index
    %c0_2 = arith.constant 0 : index
    %1 = vector.load %arg2[%c0_1, %c0_2] : memref<768x128xf32, #tpu.memory_space<vmem>>, vector<768x128xf32>
    %cst = arith.constant dense<0.000000e+00> : vector<32x128xf32>
    %2 = tpu.matmul %0, %1, %cst {dimension_numbers = #tpu.dot_dimension_numbers<[1], [0], [0], [1], [0, 0, 1, 1], [], []>} : vector<32x768xf32>, vector<768x128xf32>, vector<32x128xf32> -> vector<32x128xf32>
    %c0_3 = arith.constant 0 : index
    %c0_4 = arith.constant 0 : index
    %3 = vector.load %arg3[%c0_3, %c0_4] : memref<1x128xf32, #tpu.memory_space<vmem>>, vector<1x128xf32>
    %4 = vector.broadcast %3 : vector<1x128xf32> to vector<32x128xf32>
    %5 = arith.addf %2, %4 : vector<32x128xf32>
    %c0_5 = arith.constant 0 : index
    %c0_6 = arith.constant 0 : index
    %6 = vector.load %arg4[%c0_5, %c0_6] : memref<32x128xf32, #tpu.memory_space<vmem>>, vector<32x128xf32>
    tpu.vector_store %arg4[%c0_5, %c0_6], %5 {strides = array<i32>} : memref<32x128xf32, #tpu.memory_space<vmem>>, vector<32x128xf32>,
    return
  }
  func.func @transform_0(%arg0: i32) -> (i32, i32) {
    %c0_i32 = arith.constant 0 : i32
    %c0_i32_0 = arith.constant 0 : i32
    return %arg0, %c0_i32 : i32, i32
  }
  func.func @transform_1(%arg0: i32) -> (i32, i32) {
    %c0_i32 = arith.constant 0 : i32
    %c0_i32_0 = arith.constant 0 : i32
    %c0_i32_1 = arith.constant 0 : i32
    return %c0_i32, %c0_i32_0 : i32, i32
  }
  func.func @transform_2(%arg0: i32) -> (i32, i32) {
    %c0_i32 = arith.constant 0 : i32
    %c0_i32_0 = arith.constant 0 : i32
    %c0_i32_1 = arith.constant 0 : i32
    return %c0_i32, %c0_i32_0 : i32, i32
  }
  func.func @transform_3(%arg0: i32) -> (i32, i32) {
    %c0_i32 = arith.constant 0 : i32
    %c0_i32_0 = arith.constant 0 : i32
    return %arg0, %c0_i32 : i32, i32
  }
}

</mosaic_0001>

<bundles_post_ra>
// kernel: tpu_custom_call.1
= control target key start
LH: loop header
LB: loop body
LE: loop exit
PB: predicated region body
PF: predicated region fallthrough
CT: control target
= control target key end

     0   :  { %8 = vsyncpa [#allocation3], 0  ;;  %s730_s0 = inlined_call_operand.hbm [shape: f32[32,768], index: 0, kind: input, shape index: {}]   ;;  %s731_s1 = inlined_call_operand.hbm [shape: f32[768,128], index: 1, kind: input, shape index: {}]   ;;  %s732_s2 = inlined_call_operand.vmem [shape: f32[1,128], index: 2, kind: input, shape index: {}]   ;;  %s733_s3 = inlined_call_operand.hbm [shape: f32[32,128], index: 3, kind: output, shape index: {}]  }
   0x1   :  { %9 = vsyncpa [#allocation6], 0 }
   0x2   :  { %10 = vsyncpa [#allocation4], 0  ;;  %s685_s12 = smov [#allocation2]  }
   0x3   :  { %s16_s13 = sshll.u32 %s685_s12, 4  ;;  %s17_s13 = int_to_ptr.vmem [resolvable:$true] %s16_s13 }
   0x4   :  { %s627_s14 = scalar_lea.vmem %s17_s13, 3072  ;;  %p632_p1 = scmp.lt.s32.totalorder %s17_s13, %s17_s13 }
   0x5   :  { %p628_p0 = scmp.ne.s32.totalorder %s17_s13, %s627_s14  ;;  %p633_p2 = scmp.lt.s32.totalorder %s627_s14, %s627_s14 }
   0x7   :  { %p634_p3 = por %p633_p2, %p632_p1 }
   0x9   :  { %p635_p4 = pnand %p634_p3, %p628_p0 }
   0xb   :  { %638 = shalt.err (!%p635_p4)
}
   0xc   :  { %s686_s15 = smov 768   ;;  %s687_s16 = smov 48  }
   0xd   :  { %22 = dma.hbm_to_vmem [thread:$0]  %s730_s0, 3072, %s17_s13, [#allocation3], %s686_s15, %s686_s15, %s687_s16  }
   0xe   :  { %s688_s19 = smov [#allocation5]  }
   0xf   :  { %s28_s20 = sshll.u32 %s688_s19, 4  ;;  %s29_s20 = int_to_ptr.vmem [resolvable:$true] %s28_s20 }
  0x10   :  { %s647_s21 = scalar_lea.vmem %s29_s20, 12288  ;;  %p652_p6 = scmp.lt.s32.totalorder %s29_s20, %s29_s20 }
  0x11   :  { %p648_p5 = scmp.ne.s32.totalorder %s29_s20, %s647_s21  ;;  %p653_p7 = scmp.lt.s32.totalorder %s647_s21, %s647_s21 }
  0x13   :  { %p654_p8 = por %p653_p7, %p652_p6 }
  0x15   :  { %p655_p9 = pnand %p654_p8, %p648_p5 }
  0x17   :  { %658 = shalt.err (!%p655_p9)
}
  0x18   :  { %s689_s22 = smov 128   ;;  %s690_s23 = smov 8  }
  0x19   :  { %34 = dma.hbm_to_vmem [thread:$0]  %s731_s1, 12288, %s29_s20, [#allocation6], %s689_s22, %s689_s22, %s690_s23  }
  0x1a   :  { %679 = dma.done.wait [#allocation3], 3072  }
  0x1b   :  { %680 = vsyncadd [#allocation3], 4294964224 }
  0x1c   :  { %681 = dma.done.wait [#allocation6], 12288  }
  0x1d   :  { %682 = vsyncadd [#allocation6], 4294955008  ;;  %v98_v0 = vld [vmem:[#allocation5 + $0xf8] sm:$0xff]  ;;  %v97_v4 = vld [vmem:[#allocation5 + $0xf0] sm:$0xff] }
  0x1e   :  { %v130_v1 = vld [vmem:[#allocation5 + $0x1f8] sm:$0xff]  ;;  %448 = vmatprep.subr.mxu0 %v98_v0  ;;  %v129_v5 = vld [vmem:[#allocation5 + $0x1f0] sm:$0xff]  ;;  %v96_v8 = vld [vmem:[#allocation5 + $0xe8] sm:$0xff] }
  0x1f   :  { %v82_v2 = vld [vmem:[#allocation5 + $0x78] sm:$0xff]  ;;  %492 = vmatprep.subr.mxu1 %v130_v1  ;;  %v81_v6 = vld [vmem:[#allocation5 + $0x70] sm:$0xff]  ;;  %v128_v9 = vld [vmem:[#allocation5 + $0x1e8] sm:$0xff] }
  0x20   :  { %v114_v3 = vld [vmem:[#allocation5 + $0x178] sm:$0xff]  ;;  %449 = vmatpush3.msra.mxu0 %v82_v2  ;;  %v113_v7 = vld [vmem:[#allocation5 + $0x170] sm:$0xff]  ;;  %v80_v10 = vld [vmem:[#allocation5 + $0x68] sm:$0xff] }
  0x21   :  { %493 = vmatpush3.msra.mxu1 %v114_v3  ;;  %450 = vmatprep.subr.mxu0 %v97_v4  ;;  %v112_v11 = vld [vmem:[#allocation5 + $0x168] sm:$0xff]  ;;  %v95_v12 = vld [vmem:[#allocation5 + $0xe0] sm:$0xff]  ;;  %v94_v16 = vld [vmem:[#allocation5 + $0xd8] sm:$0xff] }
  0x22   :  { %494 = vmatprep.subr.mxu1 %v129_v5  ;;  %451 = vmatpush3.msra.mxu0 %v81_v6  ;;  %v127_v13 = vld [vmem:[#allocation5 + $0x1e0] sm:$0xff]  ;;  %v126_v17 = vld [vmem:[#allocation5 + $0x1d8] sm:$0xff]  ;;  %v93_v20 = vld [vmem:[#allocation5 + $0xd0] sm:$0xff] }
  0x23   :  { %495 = vmatpush3.msra.mxu1 %v113_v7  ;;  %452 = vmatprep.subr.mxu0 %v96_v8  ;;  %v79_v14 = vld [vmem:[#allocation5 + $0x60] sm:$0xff]  ;;  %v78_v18 = vld [vmem:[#allocation5 + $0x58] sm:$0xff]  ;;  %v125_v21 = vld [vmem:[#allocation5 + $0x1d0] sm:$0xff] }
  0x24   :  { %496 = vmatprep.subr.mxu1 %v128_v9  ;;  %v111_v15 = vld [vmem:[#allocation5 + $0x160] sm:$0xff]  ;;  %453 = vmatpush3.msra.mxu0 %v80_v10  ;;  %v110_v19 = vld [vmem:[#allocation5 + $0x158] sm:$0xff]  ;;  %v77_v22 = vld [vmem:[#allocation5 + $0x50] sm:$0xff] }
  0x25   :  { %497 = vmatpush3.msra.mxu1 %v112_v11  ;;  %454 = vmatprep.subr.mxu0 %v95_v12  ;;  %v109_v23 = vld [vmem:[#allocation5 + $0x150] sm:$0xff]  ;;  %v92_v24 = vld [vmem:[#allocation5 + $0xc8] sm:$0xff]  ;;  %v91_v28 = vld [vmem:[#allocation5 + $0xc0] sm:$0xff] }
  0x26   :  { %498 = vmatprep.subr.mxu1 %v127_v13  ;;  %455 = vmatpush3.msra.mxu0 %v79_v14  ;;  %v124_v25 = vld [vmem:[#allocation5 + $0x1c8] sm:$0xff]  ;;  %v123_v29 = vld [vmem:[#allocation5 + $0x1c0] sm:$0xff]  ;;  %v90_v32 = vld [vmem:[#allocation5 + $0xb8] sm:$0xff] }
  0x27   :  { %499 = vmatpush3.msra.mxu1 %v111_v15  ;;  %456 = vmatprep.subr.mxu0 %v94_v16  ;;  %v76_v26 = vld [vmem:[#allocation5 + $0x48] sm:$0xff]  ;;  %v75_v30 = vld [vmem:[#allocation5 + $0x40] sm:$0xff]  ;;  %v122_v33 = vld [vmem:[#allocation5 + $0x1b8] sm:$0xff] }
  0x28   :  { %500 = vmatprep.subr.mxu1 %v126_v17  ;;  %457 = vmatpush3.msra.mxu0 %v78_v18  ;;  %v108_v27 = vld [vmem:[#allocation5 + $0x148] sm:$0xff]  ;;  %v107_v31 = vld [vmem:[#allocation5 + $0x140] sm:$0xff]  ;;  %v74_v34 = vld [vmem:[#allocation5 + $0x38] sm:$0xff] }
  0x29   :  { %501 = vmatpush3.msra.mxu1 %v110_v19  ;;  %458 = vmatprep.subr.mxu0 %v93_v20  ;;  %v106_v35 = vld [vmem:[#allocation5 + $0x138] sm:$0xff]  ;;  %v89_v36 = vld [vmem:[#allocation5 + $0xb0] sm:$0xff]  ;;  %v88_v40 = vld [vmem:[#allocation5 + $0xa8] sm:$0xff] }
  0x2a   :  { %502 = vmatprep.subr.mxu1 %v125_v21  ;;  %459 = vmatpush3.msra.mxu0 %v77_v22  ;;  %v121_v37 = vld [vmem:[#allocation5 + $0x1b0] sm:$0xff]  ;;  %v120_v41 = vld [vmem:[#allocation5 + $0x1a8] sm:$0xff]  ;;  %v87_v44 = vld [vmem:[#allocation5 + $0xa0] sm:$0xff] }
  0x2b   :  { %503 = vmatpush3.msra.mxu1 %v109_v23  ;;  %460 = vmatprep.subr.mxu0 %v92_v24  ;;  %v73_v38 = vld [vmem:[#allocation5 + $0x30] sm:$0xff]  ;;  %v72_v42 = vld [vmem:[#allocation5 + $0x28] sm:$0xff]  ;;  %v119_v45 = vld [vmem:[#allocation5 + $0x1a0] sm:$0xff] }
  0x2c   :  { %504 = vmatprep.subr.mxu1 %v124_v25  ;;  %461 = vmatpush3.msra.mxu0 %v76_v26  ;;  %v105_v39 = vld [vmem:[#allocation5 + $0x130] sm:$0xff]  ;;  %v104_v43 = vld [vmem:[#allocation5 + $0x128] sm:$0xff]  ;;  %v71_v46 = vld [vmem:[#allocation5 + $0x20] sm:$0xff] }
  0x2d   :  { %505 = vmatpush3.msra.mxu1 %v108_v27  ;;  %462 = vmatprep.subr.mxu0 %v91_v28  ;;  %v103_v47 = vld [vmem:[#allocation5 + $0x120] sm:$0xff]  ;;  %v86_v48 = vld [vmem:[#allocation5 + $0x98] sm:$0xff]  ;;  %v85_v52 = vld [vmem:[#allocation5 + $0x90] sm:$0xff] }
  0x2e   :  { %506 = vmatprep.subr.mxu1 %v123_v29  ;;  %463 = vmatpush3.msra.mxu0 %v75_v30  ;;  %v118_v49 = vld [vmem:[#allocation5 + $0x198] sm:$0xff]  ;;  %v117_v53 = vld [vmem:[#allocation5 + $0x190] sm:$0xff]  ;;  %v84_v56 = vld [vmem:[#allocation5 + $0x88] sm:$0xff] }
  0x2f   :  { %507 = vmatpush3.msra.mxu1 %v107_v31  ;;  %464 = vmatprep.subr.mxu0 %v90_v32  ;;  %v70_v50 = vld [vmem:[#allocation5 + $0x18] sm:$0xff]  ;;  %v69_v54 = vld [vmem:[#allocation5 + $0x10] sm:$0xff]  ;;  %v116_v57 = vld [vmem:[#allocation5 + $0x188] sm:$0xff] }
  0x30   :  { %508 = vmatprep.subr.mxu1 %v122_v33  ;;  %465 = vmatpush3.msra.mxu0 %v74_v34  ;;  %v102_v51 = vld [vmem:[#allocation5 + $0x118] sm:$0xff]  ;;  %v101_v55 = vld [vmem:[#allocation5 + $0x110] sm:$0xff]  ;;  %v68_v58 = vld [vmem:[#allocation5 + $0x8] sm:$0xff] }
  0x31   :  { %509 = vmatpush3.msra.mxu1 %v106_v35  ;;  %466 = vmatprep.subr.mxu0 %v89_v36  ;;  %v100_v59 = vld [vmem:[#allocation5 + $0x108] sm:$0xff]  ;;  %v83_v60 = vld [vmem:[#allocation5 + $0x80] sm:$0xff]  ;;  %v46_v1 = vld [vmem:[#allocation2 + $0x18] sm:$0xff] }
  0x32   :  { %510 = vmatprep.subr.mxu1 %v121_v37  ;;  %467 = vmatpush3.msra.mxu0 %v73_v38  ;;  %v115_v61 = vld [vmem:[#allocation5 + $0x180] sm:$0xff]  ;;  %v44_v63 = vld [vmem:[#allocation2 + $0x8] sm:$0xff]  ;;  %v45_v3 = vld [vmem:[#allocation2 + $0x10] sm:$0xff] }
  0x33   :  { %511 = vmatpush3.msra.mxu1 %v105_v39  ;;  %468 = vmatprep.subr.mxu0 %v88_v40  ;;  %v67_v62 = vld [vmem:[#allocation5] sm:$0xff]  ;;  %v162_v4 = vld [vmem:[#allocation5 + $0x2f8] sm:$0xff]  ;;  %v161_v6 = vld [vmem:[#allocation5 + $0x2f0] sm:$0xff] }
  0x34   :  { %512 = vmatprep.subr.mxu1 %v120_v41  ;;  %469 = vmatpush3.msra.mxu0 %v72_v42  ;;  %v99_v0 = vld [vmem:[#allocation5 + $0x100] sm:$0xff]  ;;  %v146_v5 = vld [vmem:[#allocation5 + $0x278] sm:$0xff]  ;;  %v145_v7 = vld [vmem:[#allocation5 + $0x270] sm:$0xff] }
  0x35   :  { %513 = vmatpush3.msra.mxu1 %v104_v43  ;;  %470 = vmatprep.subr.mxu0 %v87_v44  ;;  %v43_v2 = vld [vmem:[#allocation2] sm:$0xff]  ;;  %v160_v8 = vld [vmem:[#allocation5 + $0x2e8] sm:$0xff]  ;;  %v158_v12 = vld [vmem:[#allocation5 + $0x2d8] sm:$0xff] }
  0x36   :  { %514 = vmatprep.subr.mxu1 %v119_v45  ;;  %471 = vmatpush3.msra.mxu0 %v71_v46  ;;  %v144_v9 = vld [vmem:[#allocation5 + $0x268] sm:$0xff]  ;;  %v159_v10 = vld [vmem:[#allocation5 + $0x2e0] sm:$0xff]  ;;  %v142_v13 = vld [vmem:[#allocation5 + $0x258] sm:$0xff] }
  0x37   :  { %515 = vmatpush3.msra.mxu1 %v103_v47  ;;  %472 = vmatprep.subr.mxu0 %v86_v48  ;;  %v143_v11 = vld [vmem:[#allocation5 + $0x260] sm:$0xff]  ;;  %v157_v14 = vld [vmem:[#allocation5 + $0x2d0] sm:$0xff]  ;;  %v156_v16 = vld [vmem:[#allocation5 + $0x2c8] sm:$0xff] }
  0x38   :  { %516 = vmatprep.subr.mxu1 %v118_v49  ;;  %473 = vmatpush3.msra.mxu0 %v70_v50  ;;  %v141_v15 = vld [vmem:[#allocation5 + $0x250] sm:$0xff]  ;;  %v140_v17 = vld [vmem:[#allocation5 + $0x248] sm:$0xff]  ;;  %v155_v18 = vld [vmem:[#allocation5 + $0x2c0] sm:$0xff] }
  0x39   :  { %517 = vmatpush3.msra.mxu1 %v102_v51  ;;  %474 = vmatprep.subr.mxu0 %v85_v52  ;;  %v50_v19 = vld [vmem:[#allocation2 + $0x38] sm:$0xff]  ;;  %v139_v20 = vld [vmem:[#allocation5 + $0x240] sm:$0xff]  ;;  %v49_v21 = vld [vmem:[#allocation2 + $0x30] sm:$0xff] }
  0x3a   :  { %518 = vmatprep.subr.mxu1 %v117_v53  ;;  %475 = vmatpush3.msra.mxu0 %v69_v54  ;;  %v154_v22 = vld [vmem:[#allocation5 + $0x2b8] sm:$0xff]  ;;  %v52_v23 = vld [vmem:[#allocation2 + $0x48] sm:$0xff]  ;;  %v153_v25 = vld [vmem:[#allocation5 + $0x2b0] sm:$0xff] }
  0x3b   :  { %519 = vmatpush3.msra.mxu1 %v101_v55  ;;  %476 = vmatprep.subr.mxu0 %v84_v56  ;;  %v138_v24 = vld [vmem:[#allocation5 + $0x238] sm:$0xff]  ;;  %v51_v26 = vld [vmem:[#allocation2 + $0x40] sm:$0xff]  ;;  %v56_v27 = vld [vmem:[#allocation2 + $0x68] sm:$0xff] }
  0x3c   :  { %520 = vmatprep.subr.mxu1 %v116_v57  ;;  %477 = vmatpush3.msra.mxu0 %v68_v58  ;;  %v137_v28 = vld [vmem:[#allocation5 + $0x230] sm:$0xff]  ;;  %v55_v29 = vld [vmem:[#allocation2 + $0x60] sm:$0xff]  ;;  %v152_v30 = vld [vmem:[#allocation5 + $0x2a8] sm:$0xff] }
  0x3d   :  { %521 = vmatpush3.msra.mxu1 %v100_v59  ;;  %478 = vmatprep.subr.mxu0 %v83_v60  ;;  %v58_v31 = vld [vmem:[#allocation2 + $0x78] sm:$0xff]  ;;  %v136_v32 = vld [vmem:[#allocation5 + $0x228] sm:$0xff]  ;;  %v151_v33 = vld [vmem:[#allocation5 + $0x2a0] sm:$0xff] }
  0x3e   :  { %522 = vmatprep.subr.mxu1 %v115_v61  ;;  %479 = vmatpush3.msra.mxu0 %v67_v62  ;;  %v57_v34 = vld [vmem:[#allocation2 + $0x70] sm:$0xff]  ;;  %v62_v35 = vld [vmem:[#allocation2 + $0x98] sm:$0xff]  ;;  %v135_v36 = vld [vmem:[#allocation5 + $0x220] sm:$0xff] }
  0x3f   :  { %234 = vmatprep.mubr.f32.mxu0 %v44_v63  ;;  %523 = vmatpush3.msra.mxu1 %v99_v0  ;;  %v61_v37 = vld [vmem:[#allocation2 + $0x90] sm:$0xff]  ;;  %v150_v38 = vld [vmem:[#allocation5 + $0x298] sm:$0xff]  ;;  %v64_v39 = vld [vmem:[#allocation2 + $0xa8] sm:$0xff] }
  0x40   :  { %319 = vmatprep.mubr.f32.mxu1 %v46_v1  ;;  %235 = vmatmul.mubr.f32.vlgmr.msra.gmra.mxu0 %v43_v2  ;;  %v134_v40 = vld [vmem:[#allocation5 + $0x218] sm:$0xff]  ;;  %v149_v41 = vld [vmem:[#allocation5 + $0x290] sm:$0xff]  ;;  %v63_v42 = vld [vmem:[#allocation2 + $0xa0] sm:$0xff] }
  0x41   :  { %320 = vmatmul.mubr.f32.vlgmr.msra.gmra.mxu1 %v45_v3  ;;  %536 = vmatprep.subr.mxu0 %v162_v4  ;;  %v133_v43 = vld [vmem:[#allocation5 + $0x210] sm:$0xff]  ;;  %v148_v44 = vld [vmem:[#allocation5 + $0x288] sm:$0xff]  ;;  %v147_v46 = vld [vmem:[#allocation5 + $0x280] sm:$0xff] }
  0x42   :  { %580 = vmatprep.subr.mxu1 %v162_v4  ;;  %537 = vmatpush3.msra.mxu0 %v146_v5  ;;  %v132_v45 = vld [vmem:[#allocation5 + $0x208] sm:$0xff]  ;;  %v131_v47 = vld [vmem:[#allocation5 + $0x200] sm:$0xff]  ;;  %v54_v52 = vld [vmem:[#allocation2 + $0x58] sm:$0xff] }
  0x43   :  { %596 = vmatpush3.msra.mxu1 %v146_v5  ;;  %538 = vmatprep.subr.mxu0 %v161_v6  ;;  %v48_v48 = vld [vmem:[#allocation2 + $0x28] sm:$0xff]  ;;  %v47_v50 = vld [vmem:[#allocation2 + $0x20] sm:$0xff]  ;;  %v66_v53 = vld [vmem:[#allocation2 + $0xb8] sm:$0xff] }
  0x44   :  { %581 = vmatprep.subr.mxu1 %v161_v6  ;;  %539 = vmatpush3.msra.mxu0 %v145_v7  ;;  %v60_v49 = vld [vmem:[#allocation2 + $0x88] sm:$0xff]  ;;  %v59_v51 = vld [vmem:[#allocation2 + $0x80] sm:$0xff]  ;;  %v53_v54 = vld [vmem:[#allocation2 + $0x50] sm:$0xff] }
  0x45   :  { %597 = vmatpush3.msra.mxu1 %v145_v7  ;;  %540 = vmatprep.subr.mxu0 %v160_v8  ;;  %v65_v55 = vld [vmem:[#allocation2 + $0xb0] sm:$0xff] }
  0x46   :  { %582 = vmatprep.subr.mxu1 %v160_v8  ;;  %541 = vmatpush3.msra.mxu0 %v144_v9  ;;  %v447_v8 = vld [vmem:[%s732_s2] ss:$0 sm:$0xff]  ;;  %s691_s2 = smov [#allocation7]  }
  0x47   :  { %598 = vmatpush3.msra.mxu1 %v144_v9  ;;  %542 = vmatprep.subr.mxu0 %v159_v10  ;;  %s434_s26 = sshll.u32 %s691_s2, 4  ;;  %s435_s26 = int_to_ptr.vmem [resolvable:$true] %s434_s26 }
  0x48   :  { %583 = vmatprep.subr.mxu1 %v159_v10  ;;  %543 = vmatpush3.msra.mxu0 %v143_v11  ;;  %s659_s27 = scalar_lea.vmem %s435_s26, 512  ;;  %p664_p11 = scmp.lt.s32.totalorder %s435_s26, %s435_s26 }
  0x49   :  { %599 = vmatpush3.msra.mxu1 %v143_v11  ;;  %544 = vmatprep.subr.mxu0 %v158_v12  ;;  %p660_p10 = scmp.ne.s32.totalorder %s435_s26, %s659_s27  ;;  %p665_p12 = scmp.lt.s32.totalorder %s659_s27, %s659_s27 }
  0x4a   :  { %584 = vmatprep.subr.mxu1 %v158_v12  ;;  %545 = vmatpush3.msra.mxu0 %v142_v13 }
  0x4b   :  { %600 = vmatpush3.msra.mxu1 %v142_v13  ;;  %546 = vmatprep.subr.mxu0 %v157_v14  ;;  %p666_p13 = por %p665_p12, %p664_p11 }
  0x4c   :  { %585 = vmatprep.subr.mxu1 %v157_v14  ;;  %547 = vmatpush3.msra.mxu0 %v141_v15 }
  0x4d   :  { %601 = vmatpush3.msra.mxu1 %v141_v15  ;;  %548 = vmatprep.subr.mxu0 %v156_v16  ;;  %p667_p0 = pnand %p666_p13, %p660_p10 }
  0x4e   :  { %586 = vmatprep.subr.mxu1 %v156_v16  ;;  %549 = vmatpush3.msra.mxu0 %v140_v17 }
  0x4f   :  { %602 = vmatpush3.msra.mxu1 %v140_v17  ;;  %550 = vmatprep.subr.mxu0 %v155_v18 }
  0x50   :  { %587 = vmatprep.subr.mxu1 %v155_v18  ;;  %239 = vmatprep.mubr.f32.mxu0 %v50_v19 }
  0x51   :  { %551 = vmatpush3.msra.mxu0 %v139_v20  ;;  %603 = vmatpush3.msra.mxu1 %v139_v20 }
  0x52   :  { %240 = vmatmul.mubr.f32.gmra.mxu0 %v49_v21  ;;  %552 = vmatprep.subr.mxu0 %v154_v22 }
  0x53   :  { %588 = vmatprep.subr.mxu1 %v154_v22  ;;  %324 = vmatprep.mubr.f32.mxu1 %v52_v23 }
  0x54   :  { %553 = vmatpush3.msra.mxu0 %v138_v24  ;;  %604 = vmatpush3.msra.mxu1 %v138_v24 }
  0x55   :  { %554 = vmatprep.subr.mxu0 %v153_v25  ;;  %325 = vmatmul.mubr.f32.gmra.mxu1 %v51_v26 }
  0x56   :  { %589 = vmatprep.subr.mxu1 %v153_v25  ;;  %244 = vmatprep.mubr.f32.mxu0 %v56_v27 }
  0x57   :  { %555 = vmatpush3.msra.mxu0 %v137_v28  ;;  %605 = vmatpush3.msra.mxu1 %v137_v28 }
  0x58   :  { %245 = vmatmul.mubr.f32.gmra.mxu0 %v55_v29  ;;  %556 = vmatprep.subr.mxu0 %v152_v30 }
  0x59   :  { %590 = vmatprep.subr.mxu1 %v152_v30  ;;  %329 = vmatprep.mubr.f32.mxu1 %v58_v31 }
  0x5a   :  { %557 = vmatpush3.msra.mxu0 %v136_v32  ;;  %606 = vmatpush3.msra.mxu1 %v136_v32 }
  0x5b   :  { %558 = vmatprep.subr.mxu0 %v151_v33  ;;  %330 = vmatmul.mubr.f32.gmra.mxu1 %v57_v34 }
  0x5c   :  { %591 = vmatprep.subr.mxu1 %v151_v33  ;;  %249 = vmatprep.mubr.f32.mxu0 %v62_v35 }
  0x5d   :  { %559 = vmatpush3.msra.mxu0 %v135_v36  ;;  %607 = vmatpush3.msra.mxu1 %v135_v36 }
  0x5e   :  { %250 = vmatmul.mubr.f32.gmra.mxu0 %v61_v37  ;;  %560 = vmatprep.subr.mxu0 %v150_v38 }
  0x5f   :  { %592 = vmatprep.subr.mxu1 %v150_v38  ;;  %334 = vmatprep.mubr.f32.mxu1 %v64_v39 }
  0x60   :  { %561 = vmatpush3.msra.mxu0 %v134_v40  ;;  %608 = vmatpush3.msra.mxu1 %v134_v40 }
  0x61   :  { %562 = vmatprep.subr.mxu0 %v149_v41  ;;  %335 = vmatmul.mubr.f32.gmra.mxu1 %v63_v42 }
  0x62   :  { %593 = vmatprep.subr.mxu1 %v149_v41  ;;  %563 = vmatpush3.msra.mxu0 %v133_v43 }
  0x63   :  { %609 = vmatpush3.msra.mxu1 %v133_v43  ;;  %564 = vmatprep.subr.mxu0 %v148_v44 }
  0x64   :  { %594 = vmatprep.subr.mxu1 %v148_v44  ;;  %565 = vmatpush3.msra.mxu0 %v132_v45 }
  0x65   :  { %610 = vmatpush3.msra.mxu1 %v132_v45  ;;  %566 = vmatprep.subr.mxu0 %v147_v46 }
  0x66   :  { %595 = vmatprep.subr.mxu1 %v147_v46  ;;  %567 = vmatpush3.msra.mxu0 %v131_v47 }
  0x67   :  { %611 = vmatpush3.msra.mxu1 %v131_v47  ;;  %404 = vmatprep.mubr.f32.mxu0 %v48_v48 }
  0x68   :  { %414 = vmatprep.mubr.f32.mxu1 %v60_v49  ;;  %405 = vmatmul.mubr.f32.vlgmr.msra.gmra.mxu0 %v47_v50 }
  0x69   :  { %415 = vmatmul.mubr.f32.vlgmr.msra.gmra.mxu1 %v59_v51  ;;  %409 = vmatprep.mubr.f32.mxu0 %v54_v52 }
  0x6a   :  { %419 = vmatprep.mubr.f32.mxu1 %v66_v53 }
  0x6c   :  { %410 = vmatmul.mubr.f32.gmra.mxu0 %v53_v54 }
  0x6d   :  { %420 = vmatmul.mubr.f32.gmra.mxu1 %v65_v55 }
 0x100   :  { %v480_v56 = vpop.f32.mrf.mxu0 }
 0x101   :  { %v524_v57 = vpop.f32.mrf.mxu1 }
 0x102   :  { %v481_v58 = vpop.f32.mrf.mxu0 }
 0x103   :  { %v525_v60 = vpop.f32.mrf.mxu1  ;;  %v482_v5 = vadd.f32 %v481_v58, %v480_v56 }
 0x104   :  { %v526_v16 = vadd.f32 %v525_v60, %v524_v57 }
 0x105   :  { %v237_v10 = vadd.f32 %v482_v5, %v447_v8 }
 0x107   :  { %v322_v19 = vadd.f32 %v526_v16, %v237_v10 }
 0x112   :  { %v483_v59 = vpop.f32.mrf.mxu0 }
 0x114   :  { %v484_v61 = vpop.f32.mrf.mxu0 }
 0x115   :  { %v527_v62 = vpop.f32.mrf.mxu1  ;;  %v485_v11 = vadd.f32 %v484_v61, %v483_v59 }
 0x117   :  { %v528_v63 = vpop.f32.mrf.mxu1  ;;  %v242_v20 = vadd.f32 %v485_v11, %v447_v8 }
 0x118   :  { %v486_v0 = vpop.f32.mrf.mxu0  ;;  %v529_v21 = vadd.f32 %v528_v63, %v527_v62 }
 0x11a   :  { %v487_v2 = vpop.f32.mrf.mxu0  ;;  %v327_v35 = vadd.f32 %v529_v21, %v242_v20 }
 0x11b   :  { %v530_v1 = vpop.f32.mrf.mxu1  ;;  %v488_v6 = vadd.f32 %v487_v2, %v486_v0 }
 0x11d   :  { %v531_v3 = vpop.f32.mrf.mxu1  ;;  %v247_v12 = vadd.f32 %v488_v6, %v447_v8 }
 0x11e   :  { %v489_v4 = vpop.f32.mrf.mxu0  ;;  %v532_v13 = vadd.f32 %v531_v3, %v530_v1 }
 0x120   :  { %v490_v9 = vpop.f32.mrf.mxu0  ;;  %v332_v22 = vadd.f32 %v532_v13, %v247_v12 }
 0x121   :  { %v533_v7 = vpop.f32.mrf.mxu1  ;;  %v491_v15 = vadd.f32 %v490_v9, %v489_v4 }
 0x123   :  { %v534_v14 = vpop.f32.mrf.mxu1  ;;  %v252_v25 = vadd.f32 %v491_v15, %v447_v8 }
 0x124   :  { %v535_v26 = vadd.f32 %v534_v14, %v533_v7 }
 0x126   :  { %v337_v36 = vadd.f32 %v535_v26, %v252_v25 }
 0x128   :  { %v568_v17 = vpop.f32.mrf.mxu0 }
 0x129   :  { %v574_v18 = vpop.f32.mrf.mxu1 }
 0x12a   :  { %v569_v23 = vpop.f32.mrf.mxu0 }
 0x12b   :  { %v575_v24 = vpop.f32.mrf.mxu1  ;;  %v570_v27 = vadd.f32 %v569_v23, %v568_v17 }
 0x12c   :  { %v576_v28 = vadd.f32 %v575_v24, %v574_v18  ;;  %v571_v29 = vpop.f32.mrf.mxu0 }
 0x12d   :  { %v577_v30 = vpop.f32.mrf.mxu1  ;;  %v407_v31 = vadd.f32 %v570_v27, %v322_v19 }
 0x12e   :  { %v417_v32 = vadd.f32 %v576_v28, %v332_v22  ;;  %v572_v33 = vpop.f32.mrf.mxu0 }
 0x12f   :  { %v578_v34 = vpop.f32.mrf.mxu1  ;;  %425 = vst [vmem:[#allocation7] sm:$0xff] %v407_v31  ;;  %v573_v37 = vadd.f32 %v572_v33, %v571_v29 }
 0x130   :  { %427 = vst [vmem:[#allocation7 + $0x10] sm:$0xff] %v417_v32  ;;  %v579_v38 = vadd.f32 %v578_v34, %v577_v30 }
 0x131   :  { %v412_v39 = vadd.f32 %v573_v37, %v327_v35 }
 0x132   :  { %v422_v40 = vadd.f32 %v579_v38, %v337_v36 }
 0x133   :  { %426 = vst [vmem:[#allocation7 + $0x8] sm:$0xff] %v412_v39 }
 0x134   :  { %428 = vst [vmem:[#allocation7 + $0x18] sm:$0xff] %v422_v40 }
 0x135   :  { %670 = shalt.err (!%p667_p0)
}
 0x136   :  { %440 = dma.vmem_to_hbm [thread:$0]  %s435_s26, 512, %s733_s3, [#allocation4], %s689_s22, %s689_s22, %s690_s23  }
 0x137   :  { %683 = dma.done.wait [#allocation4], 512  }
 0x138   :  { %684 = vsyncadd [#allocation4], 4294966784 }
 0x139   :  { %444 = vsyncpa [#allocation3], 1 }
 0x13a   :  { %445 = vsyncpa [#allocation6], 1 }
 0x13b   :  { %446 = vsyncpa [#allocation4], 1 }

</bundles_post_ra>
